<compile_context>
chip_gen: v5e
topology: v5e:2x2
jax: 0.10.0
libtpu: 0.0.40
codegen_flags: <defaults>
</compile_context>

<pallas_src>
import jax
import jax.numpy as jnp
from jax.experimental import pallas as pl
from jax.experimental.pallas import tpu as pltpu

BOARD_SIZE = 10                 # derived from 16*5*5 flat features
N = BOARD_SIZE * BOARD_SIZE     # 100

# Lane extents for the flattened (stride-10) spatial layout.
C1_W = 78   # conv1 output lanes: max valid l = 7*10+7 = 77
C2_W = 56   # conv2 output lanes: pooling reads up to 4*10+4 + 11 = 55
P_W = 45    # pooled lanes:       max valid l = 4*10+4 = 44
K_FC1 = 16 * P_W                # 720 flattened fc1 contraction lanes

# Row offsets inside the bf16 matmul-weight blob (all multiples of 16 so the
# packed-sublane bf16 window loads are tile-aligned).
W2P_R0 = 0          # rows   0..15  : conv2 weights  (16, 54)
W1FC_R0 = 16        # rows  16..735 : fc1 weights    (720, 120)
FW2_R0 = 736        # rows 736..855 : fc2 weights    (120, 100)
WMX_ROWS = 856


# ----------------------------------------------------------------------------
# Fused forward kernel
# ----------------------------------------------------------------------------
def ai_fused_kernel(x_ref, misc_ref, wmx_ref, open_ref, out_ref,
                    lhs2_ref, pf_ref):
    x = x_ref[...]                           # (1, 100) flattened board

    # Constant blob slices (one DMA for all of these).
    w1 = misc_ref[0:6, 0:9]                  # conv1 weights (6, 9)
    b1 = misc_ref[0:6, 16:17]                # conv1 bias    (6, 1)
    b2 = misc_ref[8:24, 0:1]                 # conv2 bias    (16, 1)
    fb1 = misc_ref[6:7, 0:120]               # fc1 bias      (1, 120)
    fb2 = misc_ref[7:8, 0:100]               # fc2 bias      (1, 100)

    # ---- conv1 (1->6, 3x3 valid) + ReLU, on the VPU -------------------------
    # Three independent accumulators (one per kernel row) expose ILP across
    # the VALU slots instead of a single 18-op dependent chain.
    rows = []
    for dy in range(3):
        base = dy * BOARD_SIZE
        acc = w1[:, 3 * dy:3 * dy + 1] * x[:, base:base + C1_W]
        acc = acc + w1[:, 3 * dy + 1:3 * dy + 2] * x[:, base + 1:base + 1 + C1_W]
        acc = acc + w1[:, 3 * dy + 2:3 * dy + 3] * x[:, base + 2:base + 2 + C1_W]
        rows.append(acc)
    f1 = jnp.maximum((rows[0] + rows[1]) + (rows[2] + b1), 0.0)   # (6, 78)

    # ---- conv2 (6->16, 3x3 valid) as ONE MXU matmul + ReLU ------------------
    # im2col: stack the 9 shifted (6,56) slices along the sublane axis.
    for t in range(9):
        dy, dx = divmod(t, 3)
        off = dy * BOARD_SIZE + dx
        lhs2_ref[t * 6:(t + 1) * 6, :] = f1[:, off:off + C2_W]
    lhs2 = lhs2_ref[...].astype(jnp.bfloat16)                     # (54, 56)
    w2p = wmx_ref[W2P_R0:W2P_R0 + 16, 0:54]                       # (16, 54) bf16
    acc2 = jnp.dot(w2p, lhs2, preferred_element_type=jnp.float32)  # (16, 56)
    r2 = jnp.maximum(acc2 + b2, 0.0)

    # ---- max_pool2d(kernel=2, stride=1): (6,6) -> (5,5) ---------------------
    pooled = jnp.maximum(
        jnp.maximum(r2[:, 0:P_W], r2[:, 1:1 + P_W]),
        jnp.maximum(r2[:, BOARD_SIZE:BOARD_SIZE + P_W],
                    r2[:, BOARD_SIZE + 1:BOARD_SIZE + 1 + P_W]),
    )                                                             # (16, 45)

    # ---- fc1 as ONE MXU matmul + ReLU ---------------------------------------
    # Flatten (channel, spatial) into a (1, 720) lane vector via scratch; the
    # host-packed (720,120) weights have zero rows at the garbage lanes.
    for c in range(16):
        pf_ref[:, c * P_W:(c + 1) * P_W] = pooled[c:c + 1, :]
    pf = pf_ref[...].astype(jnp.bfloat16)                         # (1, 720)
    h = jnp.dot(pf, wmx_ref[W1FC_R0:W1FC_R0 + K_FC1, 0:120],
                preferred_element_type=jnp.float32)               # (1, 120)
    h = jnp.maximum(h + fb1, 0.0)

    # ---- fc2 + ReLU ----------------------------------------------------------
    y = jnp.dot(h.astype(jnp.bfloat16), wmx_ref[FW2_R0:FW2_R0 + 120, 0:100],
                preferred_element_type=jnp.float32)               # (1, 100)
    y = jnp.maximum(y + fb2, 0.0)

    # ---- x = (x - min) / (max - min)   (NaN if constant, as in torch) -------
    ymin = jnp.min(y, keepdims=True)
    ymax = jnp.max(y, keepdims=True)
    # Approx reciprocal is safe: any scale error cancels in the final y/sum(y).
    y = (y - ymin) * pl.reciprocal(ymax - ymin, approx=True)

    # ---- filter_board: mask closed points, shift by mean of masked values,
    # renormalize to a probability distribution ------------------------------
    op = open_ref[...]
    m = jnp.mean(y * jnp.abs(op - 1.0), keepdims=True)
    y = (y + m) * op
    out_ref[...] = y * pl.reciprocal(jnp.sum(y, keepdims=True), approx=False)


def ai_fused_call(x_flat, packed, open_flat):
    vmem = pl.BlockSpec(memory_space=pltpu.MemorySpace.VMEM)
    return pl.pallas_call(
        ai_fused_kernel,
        out_shape=jax.ShapeDtypeStruct((1, N), jnp.float32),
        in_specs=[vmem, vmem, vmem, vmem],
        out_specs=vmem,
        scratch_shapes=[
            pltpu.VMEM((54, C2_W), jnp.float32),    # conv2 im2col LHS
            pltpu.VMEM((1, K_FC1), jnp.float32),    # flattened fc1 input
        ],
    )(x_flat, packed["misc"], packed["wmx"], open_flat)


# ----------------------------------------------------------------------------
# One-time host-side weight packing (layout plumbing, constant data).
# ----------------------------------------------------------------------------
def pack_params(params):
    w1 = params["w1"].astype(jnp.float32).reshape(6, 9)    # (6,1,3,3) -> (6,9)
    b1 = params["b1"].astype(jnp.float32).reshape(6)
    w2 = params["w2"].astype(jnp.float32)                  # (16, 6, 3, 3)
    b2 = params["b2"].astype(jnp.float32).reshape(16)
    fw1 = params["fw1"].astype(jnp.float32)                # (400, 120), x @ W
    fb1 = params["fb1"].astype(jnp.float32).reshape(120)
    fw2 = params["fw2"].astype(jnp.float32)                # (120, 100)
    fb2 = params["fb2"].astype(jnp.float32).reshape(100)

    # f32 blob: conv1 weights + all biases (one DMA, sliced in-kernel).
    misc = jnp.zeros((24, 128), jnp.float32)
    misc = misc.at[0:6, 0:9].set(w1)
    misc = misc.at[0:6, 16].set(b1)
    misc = misc.at[6, 0:120].set(fb1)
    misc = misc.at[7, 0:100].set(fb2)
    misc = misc.at[8:24, 0].set(b2)

    # conv2 as one matmul: w2p[o, (dy*3+dx)*6 + ci] = w2[o, ci, dy, dx].
    w2p = jnp.transpose(w2, (0, 2, 3, 1)).reshape(16, 54)

    # fc1: w1fc[c*45 + (y*10+x), j] = fw1[c*25 + y*5 + x, j]; zero rows mask
    # the garbage lanes (x >= 5) of the stride-10 flattened pooled map.
    fw1_r = fw1.reshape(16, 5, 5, 120)
    fw1_pad = jnp.pad(fw1_r, ((0, 0), (0, 0), (0, BOARD_SIZE - 5), (0, 0)))
    w1fc = fw1_pad.reshape(16, 5 * BOARD_SIZE, 120)[:, :P_W, :].reshape(K_FC1, 120)

    # bf16 blob with all MXU weights (segments start at multiples of 16 so the
    # packed-sublane bf16 window loads are tile-aligned).
    wmx = jnp.zeros((WMX_ROWS, 120), jnp.float32)
    wmx = wmx.at[W2P_R0:W2P_R0 + 16, 0:54].set(w2p)
    wmx = wmx.at[W1FC_R0:W1FC_R0 + K_FC1, :].set(w1fc)
    wmx = wmx.at[FW2_R0:FW2_R0 + 120, 0:100].set(fw2)

    return {"misc": misc, "wmx": wmx.astype(jnp.bfloat16)}


@jax.jit
def ai_forward(x_nchw, packed, open_points):
    x_flat = x_nchw.reshape(1, N).astype(jnp.float32)
    open_flat = open_points.reshape(1, N).astype(jnp.float32)
    return ai_fused_call(x_flat, packed, open_flat)


# ----------------------------------------------------------------------------
# Pure-JAX reference (f32) for correctness checking.
# ----------------------------------------------------------------------------
def reference_forward(x_nchw, params, open_points):
    dn = ("NCHW", "OIHW", "NCHW")
    c1 = jax.lax.conv_general_dilated(x_nchw, params["w1"], (1, 1), "VALID",
                                      dimension_numbers=dn)
    c1 = jnp.maximum(c1 + params["b1"][None, :, None, None], 0.0)
    c2 = jax.lax.conv_general_dilated(c1, params["w2"], (1, 1), "VALID",
                                      dimension_numbers=dn)
    c2 = jnp.maximum(c2 + params["b2"][None, :, None, None], 0.0)
    p = jax.lax.reduce_window(c2, -jnp.inf, jax.lax.max,
                              (1, 1, 2, 2), (1, 1, 1, 1), "VALID")
    flat = p.reshape(1, 400)
    h = jnp.maximum(flat @ params["fw1"] + params["fb1"], 0.0)
    y = jnp.maximum(h @ params["fw2"] + params["fb2"], 0.0)
    y = (y - y.min()) / (y.max() - y.min())
    op = open_points.reshape(1, N)
    m = (y * jnp.abs(op - 1.0)).mean()
    y = (y + m) * op
    return y / y.sum()


if __name__ == "__main__":
    key = jax.random.PRNGKey(0)
    ks = jax.random.split(key, 9)

    # Deterministic synthetic parameters (shapes follow the PyTorch module;
    # fc weights are stored pre-transposed so the math is x @ W).
    params = {
        "w1": 0.1 * jax.random.normal(ks[0], (6, 1, 3, 3), jnp.float32),
        "b1": 0.1 * jax.random.normal(ks[1], (6,), jnp.float32),
        "w2": 0.1 * jax.random.normal(ks[2], (16, 6, 3, 3), jnp.float32),
        "b2": 0.1 * jax.random.normal(ks[3], (16,), jnp.float32),
        "fw1": 0.1 * jax.random.normal(ks[4], (400, 120), jnp.float32),
        "fb1": 0.1 * jax.random.normal(ks[5], (1, 120), jnp.float32),
        "fw2": 0.1 * jax.random.normal(ks[6], (120, N), jnp.float32),
        "fb2": 0.1 * jax.random.normal(ks[7], (1, N), jnp.float32),
    }
    packed = pack_params(params)   # one-time, host side

    # Example board input (NCHW, like torch.full((1,1,10,10), -1) with moves).
    x = jax.random.normal(ks[8], (1, 1, BOARD_SIZE, BOARD_SIZE), jnp.float32)

    # _open_points mask: ones (open) with a few deterministic closed points.
    open_points = jnp.ones((BOARD_SIZE, BOARD_SIZE), jnp.float32)
    open_points = open_points.at[2, 3].set(0.0).at[5, 5].set(0.0).at[7, 1].set(0.0)

    out = jax.block_until_ready(ai_forward(x, packed, open_points))
    ref = reference_forward(x, params, open_points)

    assert out.shape == (1, N)
    assert bool(jnp.all(jnp.isfinite(out)))
    assert bool(jnp.allclose(jnp.sum(out), 1.0, atol=1e-4))
    # bf16 MXU operands (f32 accumulation) -> slightly looser tolerance than
    # the pure-f32 reference.
    assert bool(jnp.allclose(out, ref, rtol=2e-2, atol=1e-3))

    print("KERNEL_OK")
</pallas_src>

<mosaic_0001>
module attributes {stable_mosaic.version = 11 : i64} {
  func.func @ai_fused_kernel(%arg0: memref<1x100xf32, #tpu.memory_space<vmem>>, %arg1: memref<24x128xf32, #tpu.memory_space<vmem>>, %arg2: memref<856x120xbf16, #tpu.memory_space<vmem>>, %arg3: memref<1x100xf32, #tpu.memory_space<vmem>>, %arg4: memref<1x100xf32, #tpu.memory_space<vmem>>, %arg5: memref<54x56xf32, #tpu.memory_space<vmem>>, %arg6: memref<1x720xf32, #tpu.memory_space<vmem>>) attributes {dimension_semantics = [], scalar_prefetch = 0 : i64, scratch_operands = 2 : i64, tpu.core_type = #tpu.core_type<tc>} {
    %c0 = arith.constant 0 : index
    %c0_0 = arith.constant 0 : index
    %0 = vector.load %arg0[%c0, %c0_0] : memref<1x100xf32, #tpu.memory_space<vmem>>, vector<1x100xf32>
    %c0_1 = arith.constant 0 : index
    %c0_2 = arith.constant 0 : index
    %1 = vector.load %arg1[%c0_1, %c0_2] : memref<24x128xf32, #tpu.memory_space<vmem>>, vector<6x9xf32>
    %c0_3 = arith.constant 0 : index
    %c16 = arith.constant 16 : index
    %2 = vector.load %arg1[%c0_3, %c16] : memref<24x128xf32, #tpu.memory_space<vmem>>, vector<6x1xf32>
    %c8 = arith.constant 8 : index
    %c0_4 = arith.constant 0 : index
    %3 = vector.load %arg1[%c8, %c0_4] : memref<24x128xf32, #tpu.memory_space<vmem>>, vector<16x1xf32>
    %c6 = arith.constant 6 : index
    %c0_5 = arith.constant 0 : index
    %4 = vector.load %arg1[%c6, %c0_5] : memref<24x128xf32, #tpu.memory_space<vmem>>, vector<1x120xf32>
    %c7 = arith.constant 7 : index
    %c0_6 = arith.constant 0 : index
    %5 = vector.load %arg1[%c7, %c0_6] : memref<24x128xf32, #tpu.memory_space<vmem>>, vector<1x100xf32>
    %6 = vector.extract_strided_slice %1 {offsets = [0, 0], sizes = [6, 1], strides = [1, 1]} : vector<6x9xf32> to vector<6x1xf32>
    %7 = vector.extract_strided_slice %0 {offsets = [0, 0], sizes = [1, 78], strides = [1, 1]} : vector<1x100xf32> to vector<1x78xf32>
    %8 = vector.broadcast %6 : vector<6x1xf32> to vector<6x78xf32>
    %9 = vector.broadcast %7 : vector<1x78xf32> to vector<6x78xf32>
    %10 = arith.mulf %8, %9 : vector<6x78xf32>
    %11 = vector.extract_strided_slice %1 {offsets = [0, 1], sizes = [6, 1], strides = [1, 1]} : vector<6x9xf32> to vector<6x1xf32>
    %12 = vector.extract_strided_slice %0 {offsets = [0, 1], sizes = [1, 78], strides = [1, 1]} : vector<1x100xf32> to vector<1x78xf32>
    %13 = vector.broadcast %11 : vector<6x1xf32> to vector<6x78xf32>
    %14 = vector.broadcast %12 : vector<1x78xf32> to vector<6x78xf32>
    %15 = arith.mulf %13, %14 : vector<6x78xf32>
    %16 = arith.addf %10, %15 : vector<6x78xf32>
    %17 = vector.extract_strided_slice %1 {offsets = [0, 2], sizes = [6, 1], strides = [1, 1]} : vector<6x9xf32> to vector<6x1xf32>
    %18 = vector.extract_strided_slice %0 {offsets = [0, 2], sizes = [1, 78], strides = [1, 1]} : vector<1x100xf32> to vector<1x78xf32>
    %19 = vector.broadcast %17 : vector<6x1xf32> to vector<6x78xf32>
    %20 = vector.broadcast %18 : vector<1x78xf32> to vector<6x78xf32>
    %21 = arith.mulf %19, %20 : vector<6x78xf32>
    %22 = arith.addf %16, %21 : vector<6x78xf32>
    %23 = vector.extract_strided_slice %1 {offsets = [0, 3], sizes = [6, 1], strides = [1, 1]} : vector<6x9xf32> to vector<6x1xf32>
    %24 = vector.extract_strided_slice %0 {offsets = [0, 10], sizes = [1, 78], strides = [1, 1]} : vector<1x100xf32> to vector<1x78xf32>
    %25 = vector.broadcast %23 : vector<6x1xf32> to vector<6x78xf32>
    %26 = vector.broadcast %24 : vector<1x78xf32> to vector<6x78xf32>
    %27 = arith.mulf %25, %26 : vector<6x78xf32>
    %28 = vector.extract_strided_slice %1 {offsets = [0, 4], sizes = [6, 1], strides = [1, 1]} : vector<6x9xf32> to vector<6x1xf32>
    %29 = vector.extract_strided_slice %0 {offsets = [0, 11], sizes = [1, 78], strides = [1, 1]} : vector<1x100xf32> to vector<1x78xf32>
    %30 = vector.broadcast %28 : vector<6x1xf32> to vector<6x78xf32>
    %31 = vector.broadcast %29 : vector<1x78xf32> to vector<6x78xf32>
    %32 = arith.mulf %30, %31 : vector<6x78xf32>
    %33 = arith.addf %27, %32 : vector<6x78xf32>
    %34 = vector.extract_strided_slice %1 {offsets = [0, 5], sizes = [6, 1], strides = [1, 1]} : vector<6x9xf32> to vector<6x1xf32>
    %35 = vector.extract_strided_slice %0 {offsets = [0, 12], sizes = [1, 78], strides = [1, 1]} : vector<1x100xf32> to vector<1x78xf32>
    %36 = vector.broadcast %34 : vector<6x1xf32> to vector<6x78xf32>
    %37 = vector.broadcast %35 : vector<1x78xf32> to vector<6x78xf32>
    %38 = arith.mulf %36, %37 : vector<6x78xf32>
    %39 = arith.addf %33, %38 : vector<6x78xf32>
    %40 = vector.extract_strided_slice %1 {offsets = [0, 6], sizes = [6, 1], strides = [1, 1]} : vector<6x9xf32> to vector<6x1xf32>
    %41 = vector.extract_strided_slice %0 {offsets = [0, 20], sizes = [1, 78], strides = [1, 1]} : vector<1x100xf32> to vector<1x78xf32>
    %42 = vector.broadcast %40 : vector<6x1xf32> to vector<6x78xf32>
    %43 = vector.broadcast %41 : vector<1x78xf32> to vector<6x78xf32>
    %44 = arith.mulf %42, %43 : vector<6x78xf32>
    %45 = vector.extract_strided_slice %1 {offsets = [0, 7], sizes = [6, 1], strides = [1, 1]} : vector<6x9xf32> to vector<6x1xf32>
    %46 = vector.extract_strided_slice %0 {offsets = [0, 21], sizes = [1, 78], strides = [1, 1]} : vector<1x100xf32> to vector<1x78xf32>
    %47 = vector.broadcast %45 : vector<6x1xf32> to vector<6x78xf32>
    %48 = vector.broadcast %46 : vector<1x78xf32> to vector<6x78xf32>
    %49 = arith.mulf %47, %48 : vector<6x78xf32>
    %50 = arith.addf %44, %49 : vector<6x78xf32>
    %51 = vector.extract_strided_slice %1 {offsets = [0, 8], sizes = [6, 1], strides = [1, 1]} : vector<6x9xf32> to vector<6x1xf32>
    %52 = vector.extract_strided_slice %0 {offsets = [0, 22], sizes = [1, 78], strides = [1, 1]} : vector<1x100xf32> to vector<1x78xf32>
    %53 = vector.broadcast %51 : vector<6x1xf32> to vector<6x78xf32>
    %54 = vector.broadcast %52 : vector<1x78xf32> to vector<6x78xf32>
    %55 = arith.mulf %53, %54 : vector<6x78xf32>
    %56 = arith.addf %50, %55 : vector<6x78xf32>
    %57 = arith.addf %22, %39 : vector<6x78xf32>
    %58 = vector.broadcast %2 : vector<6x1xf32> to vector<6x78xf32>
    %59 = arith.addf %56, %58 : vector<6x78xf32>
    %60 = arith.addf %57, %59 : vector<6x78xf32>
    %cst = arith.constant 0.000000e+00 : f32
    %61 = vector.broadcast %cst : f32 to vector<6x78xf32>
    %62 = arith.maximumf %60, %61 : vector<6x78xf32>
    %63 = vector.extract_strided_slice %62 {offsets = [0, 0], sizes = [6, 56], strides = [1, 1]} : vector<6x78xf32> to vector<6x56xf32>
    %c0_7 = arith.constant 0 : index
    %c0_8 = arith.constant 0 : index
    %64 = vector.load %arg5[%c0_7, %c0_8] : memref<54x56xf32, #tpu.memory_space<vmem>>, vector<6x56xf32>
    tpu.vector_store %arg5[%c0_7, %c0_8], %63 {strides = array<i32>} : memref<54x56xf32, #tpu.memory_space<vmem>>, vector<6x56xf32>,
    %65 = vector.extract_strided_slice %62 {offsets = [0, 1], sizes = [6, 56], strides = [1, 1]} : vector<6x78xf32> to vector<6x56xf32>
    %c6_9 = arith.constant 6 : index
    %c0_10 = arith.constant 0 : index
    %66 = vector.load %arg5[%c6_9, %c0_10] : memref<54x56xf32, #tpu.memory_space<vmem>>, vector<6x56xf32>
    tpu.vector_store %arg5[%c6_9, %c0_10], %65 {strides = array<i32>} : memref<54x56xf32, #tpu.memory_space<vmem>>, vector<6x56xf32>,
    %67 = vector.extract_strided_slice %62 {offsets = [0, 2], sizes = [6, 56], strides = [1, 1]} : vector<6x78xf32> to vector<6x56xf32>
    %c12 = arith.constant 12 : index
    %c0_11 = arith.constant 0 : index
    %68 = vector.load %arg5[%c12, %c0_11] : memref<54x56xf32, #tpu.memory_space<vmem>>, vector<6x56xf32>
    tpu.vector_store %arg5[%c12, %c0_11], %67 {strides = array<i32>} : memref<54x56xf32, #tpu.memory_space<vmem>>, vector<6x56xf32>,
    %69 = vector.extract_strided_slice %62 {offsets = [0, 10], sizes = [6, 56], strides = [1, 1]} : vector<6x78xf32> to vector<6x56xf32>
    %c18 = arith.constant 18 : index
    %c0_12 = arith.constant 0 : index
    %70 = vector.load %arg5[%c18, %c0_12] : memref<54x56xf32, #tpu.memory_space<vmem>>, vector<6x56xf32>
    tpu.vector_store %arg5[%c18, %c0_12], %69 {strides = array<i32>} : memref<54x56xf32, #tpu.memory_space<vmem>>, vector<6x56xf32>,
    %71 = vector.extract_strided_slice %62 {offsets = [0, 11], sizes = [6, 56], strides = [1, 1]} : vector<6x78xf32> to vector<6x56xf32>
    %c24 = arith.constant 24 : index
    %c0_13 = arith.constant 0 : index
    %72 = vector.load %arg5[%c24, %c0_13] : memref<54x56xf32, #tpu.memory_space<vmem>>, vector<6x56xf32>
    tpu.vector_store %arg5[%c24, %c0_13], %71 {strides = array<i32>} : memref<54x56xf32, #tpu.memory_space<vmem>>, vector<6x56xf32>,
    %73 = vector.extract_strided_slice %62 {offsets = [0, 12], sizes = [6, 56], strides = [1, 1]} : vector<6x78xf32> to vector<6x56xf32>
    %c30 = arith.constant 30 : index
    %c0_14 = arith.constant 0 : index
    %74 = vector.load %arg5[%c30, %c0_14] : memref<54x56xf32, #tpu.memory_space<vmem>>, vector<6x56xf32>
    tpu.vector_store %arg5[%c30, %c0_14], %73 {strides = array<i32>} : memref<54x56xf32, #tpu.memory_space<vmem>>, vector<6x56xf32>,
    %75 = vector.extract_strided_slice %62 {offsets = [0, 20], sizes = [6, 56], strides = [1, 1]} : vector<6x78xf32> to vector<6x56xf32>
    %c36 = arith.constant 36 : index
    %c0_15 = arith.constant 0 : index
    %76 = vector.load %arg5[%c36, %c0_15] : memref<54x56xf32, #tpu.memory_space<vmem>>, vector<6x56xf32>
    tpu.vector_store %arg5[%c36, %c0_15], %75 {strides = array<i32>} : memref<54x56xf32, #tpu.memory_space<vmem>>, vector<6x56xf32>,
    %77 = vector.extract_strided_slice %62 {offsets = [0, 21], sizes = [6, 56], strides = [1, 1]} : vector<6x78xf32> to vector<6x56xf32>
    %c42 = arith.constant 42 : index
    %c0_16 = arith.constant 0 : index
    %78 = vector.load %arg5[%c42, %c0_16] : memref<54x56xf32, #tpu.memory_space<vmem>>, vector<6x56xf32>
    tpu.vector_store %arg5[%c42, %c0_16], %77 {strides = array<i32>} : memref<54x56xf32, #tpu.memory_space<vmem>>, vector<6x56xf32>,
    %79 = vector.extract_strided_slice %62 {offsets = [0, 22], sizes = [6, 56], strides = [1, 1]} : vector<6x78xf32> to vector<6x56xf32>
    %c48 = arith.constant 48 : index
    %c0_17 = arith.constant 0 : index
    %80 = vector.load %arg5[%c48, %c0_17] : memref<54x56xf32, #tpu.memory_space<vmem>>, vector<6x56xf32>
    tpu.vector_store %arg5[%c48, %c0_17], %79 {strides = array<i32>} : memref<54x56xf32, #tpu.memory_space<vmem>>, vector<6x56xf32>,
    %c0_18 = arith.constant 0 : index
    %c0_19 = arith.constant 0 : index
    %81 = vector.load %arg5[%c0_18, %c0_19] : memref<54x56xf32, #tpu.memory_space<vmem>>, vector<54x56xf32>
    %82 = arith.truncf %81 : vector<54x56xf32> to vector<54x56xbf16>
    %c0_20 = arith.constant 0 : index
    %c0_21 = arith.constant 0 : index
    %83 = vector.load %arg2[%c0_20, %c0_21] : memref<856x120xbf16, #tpu.memory_space<vmem>>, vector<16x54xbf16>
    %cst_22 = arith.constant dense<0.000000e+00> : vector<16x56xf32>
    %84 = tpu.matmul %83, %82, %cst_22 {dimension_numbers = #tpu.dot_dimension_numbers<[1], [0], [0], [1], [0, 0, 1, 1], [], []>} : vector<16x54xbf16>, vector<54x56xbf16>, vector<16x56xf32> -> vector<16x56xf32>
    %85 = vector.broadcast %3 : vector<16x1xf32> to vector<16x56xf32>
    %86 = arith.addf %84, %85 : vector<16x56xf32>
    %cst_23 = arith.constant 0.000000e+00 : f32
    %87 = vector.broadcast %cst_23 : f32 to vector<16x56xf32>
    %88 = arith.maximumf %86, %87 : vector<16x56xf32>
    %89 = vector.extract_strided_slice %88 {offsets = [0, 0], sizes = [16, 45], strides = [1, 1]} : vector<16x56xf32> to vector<16x45xf32>
    %90 = vector.extract_strided_slice %88 {offsets = [0, 1], sizes = [16, 45], strides = [1, 1]} : vector<16x56xf32> to vector<16x45xf32>
    %91 = arith.maximumf %89, %90 : vector<16x45xf32>
    %92 = vector.extract_strided_slice %88 {offsets = [0, 10], sizes = [16, 45], strides = [1, 1]} : vector<16x56xf32> to vector<16x45xf32>
    %93 = vector.extract_strided_slice %88 {offsets = [0, 11], sizes = [16, 45], strides = [1, 1]} : vector<16x56xf32> to vector<16x45xf32>
    %94 = arith.maximumf %92, %93 : vector<16x45xf32>
    %95 = arith.maximumf %91, %94 : vector<16x45xf32>
    %96 = vector.extract_strided_slice %95 {offsets = [0, 0], sizes = [1, 45], strides = [1, 1]} : vector<16x45xf32> to vector<1x45xf32>
    %c0_24 = arith.constant 0 : index
    %c0_25 = arith.constant 0 : index
    %97 = vector.load %arg6[%c0_24, %c0_25] : memref<1x720xf32, #tpu.memory_space<vmem>>, vector<1x45xf32>
    tpu.vector_store %arg6[%c0_24, %c0_25], %96 {strides = array<i32>} : memref<1x720xf32, #tpu.memory_space<vmem>>, vector<1x45xf32>,
    %98 = vector.extract_strided_slice %95 {offsets = [1, 0], sizes = [1, 45], strides = [1, 1]} : vector<16x45xf32> to vector<1x45xf32>
    %c0_26 = arith.constant 0 : index
    %c45 = arith.constant 45 : index
    %99 = vector.load %arg6[%c0_26, %c45] : memref<1x720xf32, #tpu.memory_space<vmem>>, vector<1x45xf32>
    tpu.vector_store %arg6[%c0_26, %c45], %98 {strides = array<i32>} : memref<1x720xf32, #tpu.memory_space<vmem>>, vector<1x45xf32>,
    %100 = vector.extract_strided_slice %95 {offsets = [2, 0], sizes = [1, 45], strides = [1, 1]} : vector<16x45xf32> to vector<1x45xf32>
    %c0_27 = arith.constant 0 : index
    %c90 = arith.constant 90 : index
    %101 = vector.load %arg6[%c0_27, %c90] : memref<1x720xf32, #tpu.memory_space<vmem>>, vector<1x45xf32>
    tpu.vector_store %arg6[%c0_27, %c90], %100 {strides = array<i32>} : memref<1x720xf32, #tpu.memory_space<vmem>>, vector<1x45xf32>,
    %102 = vector.extract_strided_slice %95 {offsets = [3, 0], sizes = [1, 45], strides = [1, 1]} : vector<16x45xf32> to vector<1x45xf32>
    %c0_28 = arith.constant 0 : index
    %c135 = arith.constant 135 : index
    %103 = vector.load %arg6[%c0_28, %c135] : memref<1x720xf32, #tpu.memory_space<vmem>>, vector<1x45xf32>
    tpu.vector_store %arg6[%c0_28, %c135], %102 {strides = array<i32>} : memref<1x720xf32, #tpu.memory_space<vmem>>, vector<1x45xf32>,
    %104 = vector.extract_strided_slice %95 {offsets = [4, 0], sizes = [1, 45], strides = [1, 1]} : vector<16x45xf32> to vector<1x45xf32>
    %c0_29 = arith.constant 0 : index
    %c180 = arith.constant 180 : index
    %105 = vector.load %arg6[%c0_29, %c180] : memref<1x720xf32, #tpu.memory_space<vmem>>, vector<1x45xf32>
    tpu.vector_store %arg6[%c0_29, %c180], %104 {strides = array<i32>} : memref<1x720xf32, #tpu.memory_space<vmem>>, vector<1x45xf32>,
    %106 = vector.extract_strided_slice %95 {offsets = [5, 0], sizes = [1, 45], strides = [1, 1]} : vector<16x45xf32> to vector<1x45xf32>
    %c0_30 = arith.constant 0 : index
    %c225 = arith.constant 225 : index
    %107 = vector.load %arg6[%c0_30, %c225] : memref<1x720xf32, #tpu.memory_space<vmem>>, vector<1x45xf32>
    tpu.vector_store %arg6[%c0_30, %c225], %106 {strides = array<i32>} : memref<1x720xf32, #tpu.memory_space<vmem>>, vector<1x45xf32>,
    %108 = vector.extract_strided_slice %95 {offsets = [6, 0], sizes = [1, 45], strides = [1, 1]} : vector<16x45xf32> to vector<1x45xf32>
    %c0_31 = arith.constant 0 : index
    %c270 = arith.constant 270 : index
    %109 = vector.load %arg6[%c0_31, %c270] : memref<1x720xf32, #tpu.memory_space<vmem>>, vector<1x45xf32>
    tpu.vector_store %arg6[%c0_31, %c270], %108 {strides = array<i32>} : memref<1x720xf32, #tpu.memory_space<vmem>>, vector<1x45xf32>,
    %110 = vector.extract_strided_slice %95 {offsets = [7, 0], sizes = [1, 45], strides = [1, 1]} : vector<16x45xf32> to vector<1x45xf32>
    %c0_32 = arith.constant 0 : index
    %c315 = arith.constant 315 : index
    %111 = vector.load %arg6[%c0_32, %c315] : memref<1x720xf32, #tpu.memory_space<vmem>>, vector<1x45xf32>
    tpu.vector_store %arg6[%c0_32, %c315], %110 {strides = array<i32>} : memref<1x720xf32, #tpu.memory_space<vmem>>, vector<1x45xf32>,
    %112 = vector.extract_strided_slice %95 {offsets = [8, 0], sizes = [1, 45], strides = [1, 1]} : vector<16x45xf32> to vector<1x45xf32>
    %c0_33 = arith.constant 0 : index
    %c360 = arith.constant 360 : index
    %113 = vector.load %arg6[%c0_33, %c360] : memref<1x720xf32, #tpu.memory_space<vmem>>, vector<1x45xf32>
    tpu.vector_store %arg6[%c0_33, %c360], %112 {strides = array<i32>} : memref<1x720xf32, #tpu.memory_space<vmem>>, vector<1x45xf32>,
    %114 = vector.extract_strided_slice %95 {offsets = [9, 0], sizes = [1, 45], strides = [1, 1]} : vector<16x45xf32> to vector<1x45xf32>
    %c0_34 = arith.constant 0 : index
    %c405 = arith.constant 405 : index
    %115 = vector.load %arg6[%c0_34, %c405] : memref<1x720xf32, #tpu.memory_space<vmem>>, vector<1x45xf32>
    tpu.vector_store %arg6[%c0_34, %c405], %114 {strides = array<i32>} : memref<1x720xf32, #tpu.memory_space<vmem>>, vector<1x45xf32>,
    %116 = vector.extract_strided_slice %95 {offsets = [10, 0], sizes = [1, 45], strides = [1, 1]} : vector<16x45xf32> to vector<1x45xf32>
    %c0_35 = arith.constant 0 : index
    %c450 = arith.constant 450 : index
    %117 = vector.load %arg6[%c0_35, %c450] : memref<1x720xf32, #tpu.memory_space<vmem>>, vector<1x45xf32>
    tpu.vector_store %arg6[%c0_35, %c450], %116 {strides = array<i32>} : memref<1x720xf32, #tpu.memory_space<vmem>>, vector<1x45xf32>,
    %118 = vector.extract_strided_slice %95 {offsets = [11, 0], sizes = [1, 45], strides = [1, 1]} : vector<16x45xf32> to vector<1x45xf32>
    %c0_36 = arith.constant 0 : index
    %c495 = arith.constant 495 : index
    %119 = vector.load %arg6[%c0_36, %c495] : memref<1x720xf32, #tpu.memory_space<vmem>>, vector<1x45xf32>
    tpu.vector_store %arg6[%c0_36, %c495], %118 {strides = array<i32>} : memref<1x720xf32, #tpu.memory_space<vmem>>, vector<1x45xf32>,
    %120 = vector.extract_strided_slice %95 {offsets = [12, 0], sizes = [1, 45], strides = [1, 1]} : vector<16x45xf32> to vector<1x45xf32>
    %c0_37 = arith.constant 0 : index
    %c540 = arith.constant 540 : index
    %121 = vector.load %arg6[%c0_37, %c540] : memref<1x720xf32, #tpu.memory_space<vmem>>, vector<1x45xf32>
    tpu.vector_store %arg6[%c0_37, %c540], %120 {strides = array<i32>} : memref<1x720xf32, #tpu.memory_space<vmem>>, vector<1x45xf32>,
    %122 = vector.extract_strided_slice %95 {offsets = [13, 0], sizes = [1, 45], strides = [1, 1]} : vector<16x45xf32> to vector<1x45xf32>
    %c0_38 = arith.constant 0 : index
    %c585 = arith.constant 585 : index
    %123 = vector.load %arg6[%c0_38, %c585] : memref<1x720xf32, #tpu.memory_space<vmem>>, vector<1x45xf32>
    tpu.vector_store %arg6[%c0_38, %c585], %122 {strides = array<i32>} : memref<1x720xf32, #tpu.memory_space<vmem>>, vector<1x45xf32>,
    %124 = vector.extract_strided_slice %95 {offsets = [14, 0], sizes = [1, 45], strides = [1, 1]} : vector<16x45xf32> to vector<1x45xf32>
    %c0_39 = arith.constant 0 : index
    %c630 = arith.constant 630 : index
    %125 = vector.load %arg6[%c0_39, %c630] : memref<1x720xf32, #tpu.memory_space<vmem>>, vector<1x45xf32>
    tpu.vector_store %arg6[%c0_39, %c630], %124 {strides = array<i32>} : memref<1x720xf32, #tpu.memory_space<vmem>>, vector<1x45xf32>,
    %126 = vector.extract_strided_slice %95 {offsets = [15, 0], sizes = [1, 45], strides = [1, 1]} : vector<16x45xf32> to vector<1x45xf32>
    %c0_40 = arith.constant 0 : index
    %c675 = arith.constant 675 : index
    %127 = vector.load %arg6[%c0_40, %c675] : memref<1x720xf32, #tpu.memory_space<vmem>>, vector<1x45xf32>
    tpu.vector_store %arg6[%c0_40, %c675], %126 {strides = array<i32>} : memref<1x720xf32, #tpu.memory_space<vmem>>, vector<1x45xf32>,
    %c0_41 = arith.constant 0 : index
    %c0_42 = arith.constant 0 : index
    %128 = vector.load %arg6[%c0_41, %c0_42] : memref<1x720xf32, #tpu.memory_space<vmem>>, vector<1x720xf32>
    %129 = arith.truncf %128 : vector<1x720xf32> to vector<1x720xbf16>
    %c16_43 = arith.constant 16 : index
    %c0_44 = arith.constant 0 : index
    %130 = vector.load %arg2[%c16_43, %c0_44] : memref<856x120xbf16, #tpu.memory_space<vmem>>, vector<720x120xbf16>
    %cst_45 = arith.constant dense<0.000000e+00> : vector<1x120xf32>
    %131 = tpu.matmul %129, %130, %cst_45 {dimension_numbers = #tpu.dot_dimension_numbers<[1], [0], [0], [1], [0, 0, 1, 1], [], []>} : vector<1x720xbf16>, vector<720x120xbf16>, vector<1x120xf32> -> vector<1x120xf32>
    %132 = arith.addf %131, %4 : vector<1x120xf32>
    %cst_46 = arith.constant 0.000000e+00 : f32
    %133 = vector.broadcast %cst_46 : f32 to vector<1x120xf32>
    %134 = arith.maximumf %132, %133 : vector<1x120xf32>
    %135 = arith.truncf %134 : vector<1x120xf32> to vector<1x120xbf16>
    %c736 = arith.constant 736 : index
    %c0_47 = arith.constant 0 : index
    %136 = vector.load %arg2[%c736, %c0_47] : memref<856x120xbf16, #tpu.memory_space<vmem>>, vector<120x100xbf16>
    %cst_48 = arith.constant dense<0.000000e+00> : vector<1x100xf32>
    %137 = tpu.matmul %135, %136, %cst_48 {dimension_numbers = #tpu.dot_dimension_numbers<[1], [0], [0], [1], [0, 0, 1, 1], [], []>} : vector<1x120xbf16>, vector<120x100xbf16>, vector<1x100xf32> -> vector<1x100xf32>
    %138 = arith.addf %137, %5 : vector<1x100xf32>
    %cst_49 = arith.constant 0.000000e+00 : f32
    %139 = vector.broadcast %cst_49 : f32 to vector<1x100xf32>
    %140 = arith.maximumf %138, %139 : vector<1x100xf32>
    %141 = vector.shape_cast %140 : vector<1x100xf32> to vector<1x1x100xf32>
    %cst_50 = arith.constant dense<0x7F800000> : vector<1xf32>
    %142 = vector.multi_reduction <minimumf>, %141, %cst_50 [1, 2] : vector<1x1x100xf32> to vector<1xf32>
    %143 = vector.shape_cast %142 : vector<1xf32> to vector<1x1x1xf32>
    %144 = vector.extract %143[0, 0, 0] : f32 from vector<1x1x1xf32>
    %145 = vector.broadcast %144 : f32 to vector<1x1xf32>
    %146 = vector.shape_cast %140 : vector<1x100xf32> to vector<1x1x100xf32>
    %cst_51 = arith.constant dense<0xFF800000> : vector<1xf32>
    %147 = vector.multi_reduction <maximumf>, %146, %cst_51 [1, 2] : vector<1x1x100xf32> to vector<1xf32>
    %148 = vector.shape_cast %147 : vector<1xf32> to vector<1x1x1xf32>
    %149 = vector.extract %148[0, 0, 0] : f32 from vector<1x1x1xf32>
    %150 = vector.broadcast %149 : f32 to vector<1x1xf32>
    %151 = vector.broadcast %145 : vector<1x1xf32> to vector<1x100xf32>
    %152 = arith.subf %140, %151 : vector<1x100xf32>
    %153 = arith.subf %150, %145 : vector<1x1xf32>
    %154 = tpu.reciprocal %153 {approx = true} : vector<1x1xf32> -> vector<1x1xf32>
    %155 = vector.broadcast %154 : vector<1x1xf32> to vector<1x100xf32>
    %156 = arith.mulf %152, %155 : vector<1x100xf32>
    %c0_52 = arith.constant 0 : index
    %c0_53 = arith.constant 0 : index
    %157 = vector.load %arg3[%c0_52, %c0_53] : memref<1x100xf32, #tpu.memory_space<vmem>>, vector<1x100xf32>
    %cst_54 = arith.constant 1.000000e+00 : f32
    %158 = vector.broadcast %cst_54 : f32 to vector<1x100xf32>
    %159 = arith.subf %157, %158 : vector<1x100xf32>
    %160 = math.absf %159 : vector<1x100xf32>
    %161 = arith.mulf %156, %160 : vector<1x100xf32>
    %162 = vector.shape_cast %161 : vector<1x100xf32> to vector<1x1x100xf32>
    %cst_55 = arith.constant dense<0.000000e+00> : vector<1xf32>
    %163 = vector.multi_reduction <add>, %162, %cst_55 [1, 2] : vector<1x1x100xf32> to vector<1xf32>
    %164 = vector.shape_cast %163 : vector<1xf32> to vector<1x1x1xf32>
    %165 = vector.extract %164[0, 0, 0] : f32 from vector<1x1x1xf32>
    %166 = vector.broadcast %165 : f32 to vector<1x1xf32>
    %cst_56 = arith.constant 1.000000e+02 : f32
    %167 = vector.broadcast %cst_56 : f32 to vector<1x1xf32>
    %168 = arith.divf %166, %167 : vector<1x1xf32>
    %169 = vector.broadcast %168 : vector<1x1xf32> to vector<1x100xf32>
    %170 = arith.addf %156, %169 : vector<1x100xf32>
    %171 = arith.mulf %170, %157 : vector<1x100xf32>
    %172 = vector.shape_cast %171 : vector<1x100xf32> to vector<1x1x100xf32>
    %cst_57 = arith.constant dense<0.000000e+00> : vector<1xf32>
    %173 = vector.multi_reduction <add>, %172, %cst_57 [1, 2] : vector<1x1x100xf32> to vector<1xf32>
    %174 = vector.shape_cast %173 : vector<1xf32> to vector<1x1x1xf32>
    %175 = vector.extract %174[0, 0, 0] : f32 from vector<1x1x1xf32>
    %176 = vector.broadcast %175 : f32 to vector<1x1xf32>
    %177 = tpu.reciprocal %176 : vector<1x1xf32> -> vector<1x1xf32>
    %178 = vector.broadcast %177 : vector<1x1xf32> to vector<1x100xf32>
    %179 = arith.mulf %171, %178 : vector<1x100xf32>
    %c0_58 = arith.constant 0 : index
    %c0_59 = arith.constant 0 : index
    %180 = vector.load %arg4[%c0_58, %c0_59] : memref<1x100xf32, #tpu.memory_space<vmem>>, vector<1x100xf32>
    tpu.vector_store %arg4[%c0_58, %c0_59], %179 {strides = array<i32>} : memref<1x100xf32, #tpu.memory_space<vmem>>, vector<1x100xf32>,
    return
  }
}

</mosaic_0001>

<bundles_post_ra>
// kernel: ai_forward.1
= control target key start
LH: loop header
LB: loop body
LE: loop exit
PB: predicated region body
PF: predicated region fallthrough
CT: control target
= control target key end

     0   :  { %v1392_v1 = vmov 4   ;;  %v1393_v2 = vmov 5   ;;  %s1784_s0 = inlined_call_operand.vmem [shape: f32[1,100], index: 0, kind: input, shape index: {}]   ;;  %s1785_s1 = inlined_call_operand.vmem [shape: f32[24,128], index: 1, kind: input, shape index: {}]   ;;  %s1786_s2 = inlined_call_operand.vmem [shape: bf16[856,120], index: 2, kind: input, shape index: {}]   ;;  %s1787_s3 = inlined_call_operand.vmem [shape: f32[1,100], index: 3, kind: input, shape index: {}]   ;;  %s1788_s4 = inlined_call_operand.hbm [shape: f32[1,100], index: 4, kind: output, shape index: {}]  }
   0x1   :  { %v20_v0 = vld [vmem:[%s1785_s1] sm:$0x3f]  ;;  %1348 = vset.pattern.permute.xlu0 %v1392_v1  ;;  %1350 = vset.pattern.permute.xlu1 %v1393_v2 }
   0x2   :  { %60 = vperm.xlu0 %1348, %v20_v0   ;;  %70 = vperm.xlu1 %1350, %v20_v0  }
   0x3   :  { %9 = vsyncpa [#allocation5], 0  ;;  %v1394_v3 = vmov 1   ;;  %v1395_v4 = vmov 7   ;;  %v1396_v5 = vmov 8   ;;  %v1397_v6 = vmov 3  }
   0x4   :  { %1352 = vset.pattern.permute.xlu2 %v1394_v3  ;;  %v1398_v7 = vmov 2   ;;  %v1399_v8 = vmov 6   ;;  %v1400_v9 = vmov 16   ;;  %v1359_v10 = vld [vmem:[%s1784_s0] ss:$0 sm:$0xff]  ;;  %s1401_s19 = smov 127  }
   0x5   :  { %35 = vperm.xlu2 %1352, %v20_v0   ;;  %s1402_s20 = smov 126   ;;  %v1403_v24 = vmov 0   ;;  %s1404_s0 = smov 118   ;;  %vm120_vm0 = vcmask 455680   ;;  %v22_v49 = vld [vmem:[%s1785_s1 + $0x10] sm:$0xff]  ;;  %v21_v55 = vld [vmem:[%s1785_s1 + $0x8] sm:$0xff] }
   0x6   :  { %s1405_s21 = smov 108   ;;  %s1406_s22 = smov 116   ;;  %vm187_vm1 = vcmask 1042432   ;;  %vm183_vm2 = vcmask 441344   ;;  %vm249_vm9 = vcmask 736256  }
   0x7   :  { %s1407_s23 = smov 106   ;;  %s1408_s24 = smov 107  }
   0x8   :  { %s1409_s25 = smov 117   ;;  %s1410_s6 = smov 104  }
   0x9   :  { %s1411_s7 = smov 45   ;;  %s1412_s8 = smov 90  }
   0xa   :  { %1349 = vset.pattern.permute.xlu0 %v1395_v4  ;;  %1351 = vset.pattern.permute.xlu1 %v1396_v5  ;;  %s1413_s9 = smov 7   ;;  %s1414_s10 = smov 52  }
   0xb   :  { %85 = vperm.xlu0 %1349, %v20_v0   ;;  %95 = vperm.xlu1 %1351, %v20_v0   ;;  %s1415_s11 = smov 97   ;;  %s1416_s12 = smov 14  }
   0xc   :  { %s1417_s13 = smov 59   ;;  %s1418_s14 = smov 21  }
   0xd   :  { %1353 = vset.pattern.permute.xlu2 %v1397_v6  ;;  %s1419_s15 = smov 66   ;;  %s1420_s16 = smov 111  }
   0xe   :  { %55 = vperm.xlu2 %1353, %v20_v0   ;;  %s1421_s17 = smov 28   ;;  %s1422_s18 = smov 73  }
   0xf   :  { %s1028_s28 = sshll.u32 %s1788_s4, 4  ;;  %s1029_s28 = int_to_ptr.hbm [resolvable:$true] %s1028_s28 }
  0x13   :  { %1354 = vset.pattern.permute.xlu1 %v1399_v8  ;;  %1358 = vset.pattern.permute.xlu0 %v1403_v24 }
  0x14   :  { %80 = vperm.xlu1 %1354, %v20_v0  }
  0x16   :  { %1355 = vset.pattern.permute.xlu2 %v1398_v7  ;;  %v1253_v7 = vld [vmem:[%s1786_s2] sm:$0xff] }
  0x17   :  { %45 = vperm.xlu2 %1355, %v20_v0  }
  0x1c   :  { %1356 = vset.pattern.permute.xlu1 %v1400_v9 }
  0x1f   :  { %1357 = vset.pattern.permute.xlu2 %v1403_v24 }
  0x5f   :  { %v36_v15 = vpop.permute.xlu2 %35 }
  0x60   :  { %v38_v21 = vmul.f32 %v1359_v10, %v36_v15 }
  0x68   :  { %v56_v20 = vpop.permute.xlu2 %55 }
  0x69   :  { %v58_v25 = vmul.f32 %v1359_v10, %v56_v20 }
  0x71   :  { %v46_v22 = vpop.permute.xlu2 %45 }
  0x72   :  { %v48_v23 = vmul.f32 %v1359_v10, %v46_v22  ;;  %v227_v22 = vlaneseq }
  0x74   :  { %v61_v11 = vpop.permute.xlu0 %60  ;;  %v71_v12 = vpop.permute.xlu1 %70  ;;  %vm229_vm3 = vcmp.lt.s32.totalorder %v227_v22, 45  ;;  %vm239_vm4 = vcmp.ge.s32.totalorder %v227_v22, 45  ;;  %vm240_vm5 = vcmp.lt.s32.totalorder %v227_v22, 90  ;;  %vm252_vm7 = vcmp.ge.s32.totalorder %v227_v22, 90 }
  0x75   :  { %v63_v13 = vmul.f32 %v1359_v10, %v61_v11  ;;  %v73_v14 = vmul.f32 %v1359_v10, %v71_v12  ;;  %vm241_vm6 = vmand %vm239_vm4, %vm240_vm5  ;;  %vm253_vm8 = vcmp.lt.s32.totalorder %v227_v22, 135  ;;  %vm262_vm11 = vcmp.ge.s32.totalorder %v227_v22, 7 }
  0x76   :  { %vm254_vm10 = vmand %vm252_vm7, %vm253_vm8  ;;  %vm263_vm12 = vcmp.lt.s32.totalorder %v227_v22, 52  ;;  %vm272_vm13 = vcmp.ge.s32.totalorder %v227_v22, 52  ;;  %vm273_vm14 = vcmp.lt.s32.totalorder %v227_v22, 97  ;;  %vm1512_vm5 = vcmp.ge.s32.totalorder %v227_v22, 14 }
  0x77   :  { %65 = vrot.lane.b32.xlu0 %v63_v13, %s1401_s19  ;;  %75 = vrot.lane.b32.xlu2 %v73_v14, %s1402_s20  ;;  %vm264_vm15 = vmand %vm262_vm11, %vm263_vm12  ;;  %vm1518_vm7 = vcmp.ge.s32.totalorder %v227_v22, 59  ;;  %vm306_vm8 = vcmp.lt.s32.totalorder %v227_v22, 104  ;;  %vm313_vm12 = vcmask 850944  }
  0x7d   :  { %v86_v16 = vpop.permute.xlu0 %85  ;;  %v96_v17 = vpop.permute.xlu1 %95 }
  0x7e   :  { %v88_v18 = vmul.f32 %v1359_v10, %v86_v16  ;;  %v98_v19 = vmul.f32 %v1359_v10, %v96_v17 }
  0x7f   :  { %27 = vperm.xlu2 %1357, %v20_v0  }
  0x80   :  { %90 = vrot.lane.b32.xlu1 %v88_v18, %s1401_s19  ;;  %100 = vrot.lane.b32.xlu0 %v98_v19, %s1402_s20 }
  0x86   :  { %v81_v26 = vpop.permute.xlu1 %80 }
  0x87   :  { %v83_v32 = vmul.f32 %v1359_v10, %v81_v26 }
  0x88   :  { %110 = vperm.xlu1 %1356, %v20_v0   ;;  %40 = vrot.lane.b32.xlu0 %v38_v21, %s1401_s19 }
  0x90   :  { %50 = vrot.lane.b32.xlu1 %v48_v23, %s1402_s20 }
  0xd1   :  { %v76_v29 = vpop.permute.xlu2 %75 }
  0xd9   :  { %v28_v38 = vpop.permute.xlu2 %27 }
  0xda   :  { %v33_v39 = vmul.f32 %v1359_v10, %v28_v38 }
  0xe9   :  { %v66_v27 = vpop.permute.xlu0 %65 }
  0xea   :  { %v68_v28 = vadd.f32 %v66_v27, %v58_v25 }
  0xec   :  { %v78_v30 = vadd.f32 %v76_v29, %v68_v28 }
  0xee   :  { %105 = vrot.lane.b32.xlu2 %v78_v30, %s1404_s0 }
  0xf2   :  { %v91_v31 = vpop.permute.xlu1 %90  ;;  %v101_v34 = vpop.permute.xlu0 %100 }
  0xf3   :  { %v93_v33 = vadd.f32 %v91_v31, %v83_v32 }
  0xf5   :  { %v103_v35 = vadd.f32 %v101_v34, %v93_v33 }
  0xfa   :  { %v111_v36 = vpop.permute.xlu1 %110  ;;  %v41_v40 = vpop.permute.xlu0 %40 }
  0xfb   :  { %v113_v37 = vadd.f32 %v111_v36, %v103_v35  ;;  %v43_v41 = vadd.f32 %v41_v40, %v33_v39 }
  0xfd   :  { %115 = vrot.lane.b32.xlu0 %v113_v37, %s1405_s21 }
 0x102   :  { %v51_v42 = vpop.permute.xlu1 %50 }
 0x103   :  { %v53_v43 = vadd.f32 %v51_v42, %v43_v41 }
 0x148   :  { %v106_v44 = vpop.permute.xlu2 %105 }
 0x149   :  { %v108_v45 = vadd.f32 %v106_v44, %v53_v43 }
 0x16f   :  { %v116_v46 = vpop.permute.xlu0 %115 }
 0x170   :  { %v118_v47 = vadd.f32 %v116_v46, %v108_v45 }
 0x172   :  { %v119_v48 = vmax.f32 %v118_v47, 0.0 }
 0x174   :  { %143 = vrot.lane.b32.xlu0 %v119_v48, %s1405_s21  ;;  %139 = vrot.lane.b32.xlu2 %v119_v48, %s1406_s22  ;;  %121 = vst.msk [vmem:[#allocation2] sm:$0x3f] %vm120_vm0, %v119_v48 }
 0x175   :  { %151 = vrot.lane.b32.xlu1 %v119_v48, %s1407_s23 }
 0x17c   :  { %131 = vrot.lane.b32.xlu0 %v119_v48, %s1404_s0  ;;  %127 = vrot.lane.b32.xlu2 %v119_v48, %s1402_s20 }
 0x17d   :  { %147 = vrot.lane.b32.xlu1 %v119_v48, %s1408_s24  ;;  %s1425_s24 = smov [#allocation4]  }
 0x184   :  { %123 = vrot.lane.b32.xlu2 %v119_v48, %s1401_s19  ;;  %170 = vperm.xlu0 %1358, %v21_v55  }
 0x185   :  { %135 = vrot.lane.b32.xlu1 %v119_v48, %s1409_s25  ;;  %s1026_s25 = sshll.u32 %s1425_s24, 4  ;;  %s1027_s25 = int_to_ptr.vmem [resolvable:$true] %s1026_s25 }
 0x18c   :  { %175 = vperm.xlu2 %1357, %v22_v49   ;;  %v1296_v49 = vld [vmem:[%s1786_s2 + $0x158] sm:$0xff] }
 0x1ce   :  { %v140_v50 = vpop.permute.xlu2 %139 }
 0x1cf   :  { %142 = vst.msk [vmem:[#allocation2 + $0x1e] sm:$0x3f] %vm120_vm0, %v140_v50  ;;  %v1287_v50 = vld [vmem:[%s1786_s2 + $0x110] sm:$0xff] }
 0x1d6   :  { %v128_v51 = vpop.permute.xlu2 %127 }
 0x1d7   :  { %130 = vst.msk [vmem:[#allocation2 + $0xc] sm:$0x3f] %vm120_vm0, %v128_v51 }
 0x1de   :  { %v124_v52 = vpop.permute.xlu2 %123 }
 0x1df   :  { %126 = vst.msk [vmem:[#allocation2 + $0x6] sm:$0x3f] %vm120_vm0, %v124_v52 }
 0x1e6   :  { %v144_v53 = vpop.permute.xlu0 %143  ;;  %v155_v4 = vld [vmem:[#allocation2] sm:$0xff]  ;;  %v156_v5 = vld [vmem:[#allocation2 + $0x8] sm:$0xff]  ;;  %v176_v12 = vpop.permute.xlu2 %175 }
 0x1e7   :  { %146 = vst.msk [vmem:[#allocation2 + $0x24] sm:$0x3f] %vm120_vm0, %v144_v53  ;;  %v152_v54 = vpop.permute.xlu1 %151  ;;  %v162_v6 = vpack.c.bf16 %v156_v5, %v155_v4  ;;  %v1261_v53 = vld [vmem:[%s1786_s2 + $0x40] sm:$0xff]  ;;  %v1284_v4 = vld [vmem:[%s1786_s2 + $0xf8] sm:$0xff] }
 0x1e8   :  { %154 = vst.msk [vmem:[#allocation2 + $0x30] sm:$0x3f] %vm120_vm0, %v152_v54  ;;  %780 = vmatpush.bf16.msra.mxu1 %v1261_v53  ;;  %v1257_v5 = vld [vmem:[%s1786_s2 + $0x20] sm:$0xff]  ;;  %v1286_v53 = vld [vmem:[%s1786_s2 + $0x108] sm:$0xff] }
 0x1ee   :  { %v132_v56 = vpop.permute.xlu0 %131  ;;  %v159_v62 = vld [vmem:[#allocation2 + $0x20] sm:$0xff] }
 0x1ef   :  { %134 = vst.msk [vmem:[#allocation2 + $0x12] sm:$0x3f] %vm120_vm0, %v132_v56  ;;  %v148_v57 = vpop.permute.xlu1 %147  ;;  %v161_v58 = vld [vmem:[#allocation2 + $0x30] sm:$0x3f] }
 0x1f0   :  { %150 = vst.msk [vmem:[#allocation2 + $0x2a] sm:$0x3f] %vm120_vm0, %v148_v57  ;;  %v165_v59 = vpack.c.bf16 %v161_v58, %v161_v58  ;;  %v1260_v56 = vld [vmem:[%s1786_s2 + $0x38] sm:$0xff]  ;;  %v1259_v57 = vld [vmem:[%s1786_s2 + $0x30] sm:$0xff]  ;;  %v1258_v58 = vld [vmem:[%s1786_s2 + $0x28] sm:$0xff] }
 0x1f1   :  { %781 = vmatpush.bf16.msra.mxu1 %v1260_v56 }
 0x1f2   :  { %v189_v60 = vsel %vm187_vm1, %v165_v59, 0  ;;  %vm285_vm1 = vcmp.ge.s32.totalorder %v227_v22, 97  ;;  %v1269_v59 = vld [vmem:[%s1786_s2 + $0x80] sm:$0xff] }
 0x1f3   :  { %195 = vmatpush.bf16.msra.mxu0 %v189_v60  ;;  %v1277_v60 = vld [vmem:[%s1786_s2 + $0xc0] sm:$0xff]  ;;  %793 = vmatpush.bf16.msra.mxu2 %v1269_v59 }
 0x1f4   :  { %806 = vmatpush.bf16.msra.mxu3 %v1277_v60 }
 0x1f5   :  { %782 = vmatpush.bf16.msra.mxu1 %v1259_v57  ;;  %v874_v57 = vld [vmem:[%s1786_s2 + $0x1a8] sm:$0xf] }
 0x1f6   :  { %v157_v1 = vld [vmem:[#allocation2 + $0x10] sm:$0xff]  ;;  %v171_v8 = vpop.permute.xlu0 %170 }
 0x1f7   :  { %v136_v61 = vpop.permute.xlu1 %135  ;;  %v160_v63 = vld [vmem:[#allocation2 + $0x28] sm:$0xff] }
 0x1f8   :  { %138 = vst.msk [vmem:[#allocation2 + $0x18] sm:$0x3f] %vm120_vm0, %v136_v61  ;;  %v164_v0 = vpack.c.bf16 %v160_v63, %v159_v62  ;;  %vm274_vm0 = vmand %vm272_vm13, %vm273_vm14  ;;  %v1285_v63 = vld [vmem:[%s1786_s2 + $0x100] sm:$0xff] }
 0x1f9   :  { %vm307_vm13 = vmand %vm1518_vm7, %vm306_vm8  ;;  %783 = vmatpush.bf16.msra.mxu1 %v1258_v58  ;;  %vm346_vm7 = vcmask 908288   ;;  %v904_v58 = vunpack.c.l.b16 %v874_v57 }
 0x1fa   :  { %196 = vmatpush.bf16.msra.mxu0 %v164_v0 }
 0x1fb   :  { %v912_v60 = vpack.c.b16 %v904_v58, %v904_v58 }
 0x1fd   :  { %784 = vmatpush.bf16.msra.mxu1 %v1257_v5 }
 0x1ff   :  { %v158_v2 = vld [vmem:[#allocation2 + $0x18] sm:$0xff] }
 0x200   :  { %v163_v3 = vpack.c.bf16 %v158_v2, %v157_v1  ;;  %v1268_v2 = vld [vmem:[%s1786_s2 + $0x78] sm:$0xff] }
 0x201   :  { %794 = vmatpush.bf16.msra.mxu2 %v1268_v2 }
 0x202   :  { %197 = vmatpush.bf16.msra.mxu0 %v163_v3  ;;  %v1276_v3 = vld [vmem:[%s1786_s2 + $0xb8] sm:$0xff] }
 0x203   :  { %807 = vmatpush.bf16.msra.mxu3 %v1276_v3 }
 0x206   :  { %198 = vmatpush.bf16.msra.mxu0 %v162_v6 }
 0x209   :  { %1041 = vmatmul.msk.bf16.vlgmr.msra.gmra.mxu0 %vm183_vm2, %v1253_v7  ;;  %vm286_vm2 = vcmp.lt.s32.totalorder %v227_v22, 142  ;;  %v1267_v7 = vld [vmem:[%s1786_s2 + $0x70] sm:$0xff] }
 0x20a   :  { %vm287_vm4 = vmand %vm285_vm1, %vm286_vm2  ;;  %vm1561_vm1 = vcmp.ge.s32.totalorder %v227_v22, 66  ;;  %vm1566_vm2 = vcmp.lt.s32.totalorder %v227_v22, 111  ;;  %819 = vmatpush.bf16.msrb.mxu0 %v1285_v63  ;;  %795 = vmatpush.bf16.msra.mxu2 %v1267_v7 }
 0x20e   :  { %820 = vmatpush.bf16.msrb.mxu0 %v1284_v4 }
 0x286   :  { %v200_v9 = vpop.f32.mrf.mxu0 }
 0x287   :  { %v201_v10 = vadd.f32 %v200_v9, %v171_v8  ;;  %v1275_v8 = vld [vmem:[%s1786_s2 + $0xb0] sm:$0xff] }
 0x288   :  { %808 = vmatpush.bf16.msra.mxu3 %v1275_v8 }
 0x289   :  { %v205_v11 = vmax.f32 %v201_v10, 0.0  ;;  %v1283_v10 = vld [vmem:[%s1786_s2 + $0xf0] sm:$0xff] }
 0x28a   :  { %821 = vmatpush.bf16.msrb.mxu0 %v1283_v10  ;;  %v1305_v10 = vld [vmem:[%s1786_s2 + $0x1a0] sm:$0xff] }
 0x28b   :  { %209 = vrot.lane.b32.xlu1 %v205_v11, %s1401_s19 }
 0x28e   :  { %v202_v13 = vpop.f32.mrf.mxu0 }
 0x28f   :  { %v203_v14 = vadd.f32 %v202_v13, %v176_v12  ;;  %v1255_v12 = vld [vmem:[%s1786_s2 + $0x10] sm:$0xff]  ;;  %v1266_v13 = vld [vmem:[%s1786_s2 + $0x68] sm:$0xff] }
 0x290   :  { %796 = vmatpush.bf16.msra.mxu2 %v1266_v13  ;;  %v1302_v13 = vld [vmem:[%s1786_s2 + $0x188] sm:$0xff] }
 0x291   :  { %v206_v15 = vmax.f32 %v203_v14, 0.0  ;;  %v1274_v14 = vld [vmem:[%s1786_s2 + $0xa8] sm:$0xff] }
 0x292   :  { %809 = vmatpush.bf16.msra.mxu3 %v1274_v14  ;;  %v1301_v14 = vld [vmem:[%s1786_s2 + $0x180] sm:$0xff] }
 0x293   :  { %211 = vrot.lane.b32.xlu2 %v206_v15, %s1401_s19  ;;  %s1423_s19 = smov 35  }
 0x2ed   :  { %v212_v16 = vpop.permute.xlu2 %211 }
 0x2ee   :  { %v216_v17 = vmax.f32 %v206_v15, %v212_v16  ;;  %v1282_v15 = vld [vmem:[%s1786_s2 + $0xe8] sm:$0xff] }
 0x2ef   :  { %822 = vmatpush.bf16.msrb.mxu0 %v1282_v15  ;;  %v1254_v16 = vld [vmem:[%s1786_s2 + $0x8] sm:$0xff]  ;;  %v1300_v15 = vld [vmem:[%s1786_s2 + $0x178] sm:$0xff] }
 0x2f0   :  { %221 = vrot.lane.b32.xlu0 %v216_v17, %s1404_s0 }
 0x2fd   :  { %v210_v18 = vpop.permute.xlu1 %209 }
 0x2fe   :  { %v215_v19 = vmax.f32 %v205_v11, %v210_v18  ;;  %v1256_v11 = vld [vmem:[%s1786_s2 + $0x18] sm:$0xff]  ;;  %v1273_v18 = vld [vmem:[%s1786_s2 + $0xa0] sm:$0xff] }
 0x2ff   :  { %785 = vmatpush.bf16.msra.mxu1 %v1256_v11  ;;  %810 = vmatpush.bf16.msra.mxu3 %v1273_v18  ;;  %v1304_v11 = vld [vmem:[%s1786_s2 + $0x198] sm:$0xff] }
 0x300   :  { %219 = vrot.lane.b32.xlu1 %v215_v19, %s1404_s0 }
 0x303   :  { %786 = vmatpush.bf16.msra.mxu1 %v1255_v12  ;;  %v1303_v12 = vld [vmem:[%s1786_s2 + $0x190] sm:$0xff] }
 0x307   :  { %787 = vmatpush.bf16.msra.mxu1 %v1254_v16  ;;  %v1299_v16 = vld [vmem:[%s1786_s2 + $0x170] sm:$0xff] }
 0x362   :  { %v222_v20 = vpop.permute.xlu0 %221 }
 0x363   :  { %v1489_v21 = vmax.f32 %v216_v17, %v222_v20  ;;  %v1265_v17 = vld [vmem:[%s1786_s2 + $0x60] sm:$0xff] }
 0x364   :  { %v1293_v20 = vld [vmem:[%s1786_s2 + $0x140] sm:$0xff]  ;;  %797 = vmatpush.bf16.msra.mxu2 %v1265_v17 }
 0x365   :  { %310 = vrot.lane.b32.xlu0 %v1489_v21, %s1410_s6  ;;  %832 = vmatpush.bf16.msrb.mxu1 %v1293_v20 }
 0x372   :  { %v220_v23 = vpop.permute.xlu1 %219 }
 0x373   :  { %v225_v24 = vmax.f32 %v215_v19, %v220_v23  ;;  %v1281_v19 = vld [vmem:[%s1786_s2 + $0xe0] sm:$0xff] }
 0x374   :  { %823 = vmatpush.bf16.msrb.mxu0 %v1281_v19  ;;  %v23_v19 = vld [vmem:[%s1785_s1 + $0x6] sm:$0x1] }
 0x375   :  { %233 = vst [vmem:[#allocation1] sm:$0xff] %v225_v24 }
 0x376   :  { %231 = vst.msk [vmem:[#allocation3] sm:$0x1] %vm229_vm3, %v225_v24  ;;  %vm282_vm3 = vcmask 793600  }
 0x37c   :  { %v235_v25 = vld [vmem:[#allocation1 + $0x1] ss:$9 sm:$0xff] }
 0x37d   :  { %243 = vst [vmem:[#allocation1] sm:$0xff] %v225_v24  ;;  %236 = vrot.lane.b32.xlu2 %v235_v25, %s1411_s7  ;;  %v1264_v25 = vld [vmem:[%s1786_s2 + $0x58] sm:$0xff] }
 0x37e   :  { %798 = vmatpush.bf16.msra.mxu2 %v1264_v25 }
 0x384   :  { %v245_v26 = vld [vmem:[#allocation1 + $0x2] ss:$9 sm:$0xff] }
 0x385   :  { %256 = vst [vmem:[#allocation1] sm:$0xff] %v225_v24  ;;  %246 = vrot.lane.b32.xlu1 %v245_v26, %s1412_s8 }
 0x38c   :  { %v258_v27 = vld [vmem:[#allocation1 + $0x3] ss:$9 sm:$0xff] }
 0x38d   :  { %266 = vst [vmem:[#allocation1] sm:$0xff] %v225_v24  ;;  %259 = vrot.lane.b32.xlu1 %v258_v27, %s1413_s9  ;;  %v1272_v27 = vld [vmem:[%s1786_s2 + $0x98] sm:$0xff] }
 0x38e   :  { %811 = vmatpush.bf16.msra.mxu3 %v1272_v27 }
 0x394   :  { %v268_v28 = vld [vmem:[#allocation1 + $0x4] ss:$9 sm:$0xff] }
 0x395   :  { %269 = vrot.lane.b32.xlu2 %v268_v28, %s1414_s10  ;;  %276 = vst [vmem:[#allocation1] sm:$0xff] %v225_v24  ;;  %v1280_v28 = vld [vmem:[%s1786_s2 + $0xd8] sm:$0xff] }
 0x396   :  { %824 = vmatpush.bf16.msrb.mxu0 %v1280_v28 }
 0x39c   :  { %v278_v29 = vld [vmem:[#allocation1 + $0x5] ss:$9 sm:$0xff] }
 0x39d   :  { %279 = vrot.lane.b32.xlu0 %v278_v29, %s1415_s11  ;;  %289 = vst [vmem:[#allocation1] sm:$0xff] %v225_v24  ;;  %v1292_v29 = vld [vmem:[%s1786_s2 + $0x138] sm:$0xff] }
 0x39e   :  { %833 = vmatpush.bf16.msrb.mxu1 %v1292_v29 }
 0x3a4   :  { %v291_v30 = vld [vmem:[#allocation1 + $0x6] ss:$9 sm:$0xff] }
 0x3a5   :  { %292 = vrot.lane.b32.xlu1 %v291_v30, %s1416_s12  ;;  %299 = vst [vmem:[#allocation1] sm:$0xff] %v225_v24  ;;  %v1263_v30 = vld [vmem:[%s1786_s2 + $0x50] sm:$0xff] }
 0x3a6   :  { %799 = vmatpush.bf16.msra.mxu2 %v1263_v30 }
 0x3ac   :  { %v301_v31 = vld [vmem:[#allocation1 + $0x7] ss:$9 sm:$0xff] }
 0x3ad   :  { %302 = vrot.lane.b32.xlu2 %v301_v31, %s1417_s13  ;;  %320 = vst [vmem:[#allocation1] sm:$0xff] %v1489_v21 }
 0x3b4   :  { %v322_v32 = vld [vmem:[#allocation1 + $0x1] ss:$9 sm:$0xff] }
 0x3b5   :  { %323 = vrot.lane.b32.xlu1 %v322_v32, %s1418_s14  ;;  %330 = vst [vmem:[#allocation1] sm:$0xff] %v1489_v21 }
 0x3bc   :  { %v332_v33 = vld [vmem:[#allocation1 + $0x2] ss:$9 sm:$0xff] }
 0x3bd   :  { %333 = vrot.lane.b32.xlu2 %v332_v33, %s1419_s15  ;;  %340 = vst [vmem:[#allocation1] sm:$0xff] %v1489_v21 }
 0x3c4   :  { %v342_v34 = vld [vmem:[#allocation1 + $0x3] ss:$9 sm:$0xff] }
 0x3c5   :  { %343 = vrot.lane.b32.xlu0 %v342_v34, %s1420_s16  ;;  %353 = vst [vmem:[#allocation1] sm:$0xff] %v1489_v21  ;;  %v1271_v34 = vld [vmem:[%s1786_s2 + $0x90] sm:$0xff] }
 0x3c6   :  { %812 = vmatpush.bf16.msra.mxu3 %v1271_v34 }
 0x3cc   :  { %v355_v35 = vld [vmem:[#allocation1 + $0x4] ss:$9 sm:$0xff] }
 0x3cd   :  { %356 = vrot.lane.b32.xlu1 %v355_v35, %s1421_s17  ;;  %363 = vst [vmem:[#allocation1] sm:$0xff] %v1489_v21  ;;  %v1279_v35 = vld [vmem:[%s1786_s2 + $0xd0] sm:$0xff] }
 0x3ce   :  { %825 = vmatpush.bf16.msrb.mxu0 %v1279_v35 }
 0x3d4   :  { %v365_v36 = vld [vmem:[#allocation1 + $0x5] ss:$9 sm:$0xff] }
 0x3d5   :  { %366 = vrot.lane.b32.xlu2 %v365_v36, %s1422_s18  ;;  %373 = vst [vmem:[#allocation1] sm:$0xff] %v1489_v21 }
 0x3d7   :  { %v237_v37 = vpop.permute.xlu2 %236  ;;  %v311_v45 = vpop.permute.xlu0 %310 }
 0x3d8   :  { %242 = vst.msk [vmem:[#allocation3] sm:$0x1] %vm241_vm6, %v237_v37  ;;  %vm296_vm6 = vcmp.lt.s32.totalorder %v227_v22, 59  ;;  %v312_v51 = vrot.slane %v311_v45, 7 }
 0x3d9   :  { %vm297_vm11 = vmand %vm1512_vm5, %vm296_vm6  ;;  %vm1630_vm5 = vcmp.ge.s32.totalorder %v227_v22, 111  ;;  %vm1635_vm6 = vcmp.lt.s32.totalorder %v227_v22, 156 }
 0x3da   :  { %v314_v55 = vsel %vm313_vm12, %v312_v51, %v311_v45  ;;  %vm351_vm8 = vmand %vm1630_vm5, %vm1635_vm6  ;;  %vm1680_vm12 = vcmp.lt.s32.totalorder %v227_v22, 118  ;;  %v1295_v51 = vld [vmem:[%s1786_s2 + $0x150] sm:$0xff]  ;;  %vm924_vm6 = vcmask 1043456  }
 0x3db   :  { %v926_v61 = vsel %vm924_vm6, %v912_v60, 0 }
 0x3dc   :  { %v375_v38 = vld [vmem:[#allocation1 + $0x6] ss:$9 sm:$0xff] }
 0x3dd   :  { %376 = vrot.lane.b32.xlu0 %v375_v38, %s1404_s0  ;;  %386 = vst [vmem:[#allocation1] sm:$0xff] %v1489_v21  ;;  %v1291_v38 = vld [vmem:[%s1786_s2 + $0x130] sm:$0xff] }
 0x3de   :  { %834 = vmatpush.bf16.msrb.mxu1 %v1291_v38 }
 0x3e4   :  { %v388_v39 = vld [vmem:[#allocation1 + $0x7] ss:$9 sm:$0xff] }
 0x3e5   :  { %389 = vrot.lane.b32.xlu0 %v388_v39, %s1423_s19  ;;  %v1262_v39 = vld [vmem:[%s1786_s2 + $0x48] sm:$0xff] }
 0x3e6   :  { %800 = vmatpush.bf16.msra.mxu2 %v1262_v39  ;;  %v24_v39 = vld [vmem:[%s1785_s1 + $0x7] sm:$0x1] }
 0x3ef   :  { %v270_v44 = vpop.permute.xlu2 %269 }
 0x3f7   :  { %v247_v40 = vpop.permute.xlu1 %246 }
 0x3f8   :  { %v248_v41 = vrot.slane %v247_v40, 7 }
 0x3fa   :  { %v250_v42 = vsel %vm249_vm9, %v248_v41, %v247_v40  ;;  %vm316_vm9 = vcmp.ge.s32.totalorder %v227_v22, 104  ;;  %v1270_v40 = vld [vmem:[%s1786_s2 + $0x88] sm:$0xff] }
 0x3fb   :  { %255 = vst.msk [vmem:[#allocation3] sm:$0x3] %vm254_vm10, %v250_v42  ;;  %vm317_vm10 = vcmp.lt.s32.totalorder %v227_v22, 149  ;;  %v1278_v41 = vld [vmem:[%s1786_s2 + $0xc8] sm:$0xff]  ;;  %813 = vmatpush.bf16.msra.mxu3 %v1270_v40 }
 0x3fc   :  { %vm318_vm14 = vmand %vm316_vm9, %vm317_vm10  ;;  %vm1659_vm9 = vcmp.ge.s32.totalorder %v227_v22, 28  ;;  %vm1664_vm10 = vcmp.lt.s32.totalorder %v227_v22, 73  ;;  %826 = vmatpush.bf16.msrb.mxu0 %v1278_v41 }
 0x3ff   :  { %v260_v43 = vpop.permute.xlu1 %259  ;;  %928 = vmatpush.bf16.msrb.mxu3 %v926_v61 }
 0x400   :  { %265 = vst.msk [vmem:[#allocation3 + $0x1] sm:$0x1] %vm264_vm15, %v260_v43  ;;  %vm1548_vm15 = vcmp.ge.s32.totalorder %v227_v22, 21  ;;  %v1290_v43 = vld [vmem:[%s1786_s2 + $0x128] sm:$0xff] }
 0x401   :  { %275 = vst.msk [vmem:[#allocation3 + $0x1] sm:$0x1] %vm274_vm0, %v270_v44  ;;  %vm1553_vm0 = vcmp.lt.s32.totalorder %v227_v22, 66  ;;  %v1298_v44 = vld [vmem:[%s1786_s2 + $0x168] sm:$0xff]  ;;  %835 = vmatpush.bf16.msrb.mxu1 %v1290_v43 }
 0x402   :  { %848 = vmatpush.bf16.msrb.mxu2 %v1298_v44 }
 0x403   :  { %929 = vmatpush.bf16.msrb.mxu3 %v1305_v10 }
 0x407   :  { %v303_v54 = vpop.permute.xlu2 %302  ;;  %930 = vmatpush.bf16.msrb.mxu3 %v1304_v11 }
 0x40b   :  { %931 = vmatpush.bf16.msrb.mxu3 %v1303_v12 }
 0x40f   :  { %v280_v46 = vpop.permute.xlu0 %279  ;;  %932 = vmatpush.bf16.msrb.mxu3 %v1302_v13  ;;  %v1424_v13 = vmov 100.0  }
 0x410   :  { %v281_v47 = vrot.slane %v280_v46, 7 }
 0x412   :  { %v283_v48 = vsel %vm282_vm3, %v281_v47, %v280_v46  ;;  %vm328_vm3 = vmand %vm1548_vm15, %vm1553_vm0  ;;  %v1289_v46 = vld [vmem:[%s1786_s2 + $0x120] sm:$0xff]  ;;  %vm382_vm15 = vcmp.ge.s32.totalorder %v227_v22, 118  ;;  %vm383_vm0 = vcmp.lt.s32.totalorder %v227_v22, 163 }
 0x413   :  { %288 = vst.msk [vmem:[#allocation3 + $0x1] sm:$0x3] %vm287_vm4, %v283_v48  ;;  %vm338_vm4 = vmand %vm1561_vm1, %vm1566_vm2  ;;  %v1297_v47 = vld [vmem:[%s1786_s2 + $0x160] sm:$0xff]  ;;  %836 = vmatpush.bf16.msrb.mxu1 %v1289_v46  ;;  %v1288_v48 = vld [vmem:[%s1786_s2 + $0x118] sm:$0xff]  ;;  %vm379_vm1 = vcmask 965632   ;;  %933 = vmatpush.bf16.msrb.mxu3 %v1301_v14 }
 0x414   :  { %849 = vmatpush.bf16.msrb.mxu2 %v1297_v47  ;;  %vm384_vm2 = vmand %vm382_vm15, %vm383_vm0 }
 0x417   :  { %v293_v52 = vpop.permute.xlu1 %292  ;;  %v334_v9 = vpop.permute.xlu2 %333  ;;  %837 = vmatpush.bf16.msrb.mxu1 %v1288_v48  ;;  %934 = vmatpush.bf16.msrb.mxu3 %v1300_v15 }
 0x418   :  { %298 = vst.msk [vmem:[#allocation3 + $0x2] sm:$0x1] %vm297_vm11, %v293_v52  ;;  %vm1675_vm11 = vcmp.ge.s32.totalorder %v227_v22, 73  ;;  %850 = vmatpush.bf16.msrb.mxu2 %v1296_v49 }
 0x419   :  { %308 = vst.msk [vmem:[#allocation3 + $0x2] sm:$0x1] %vm307_vm13, %v303_v54  ;;  %vm361_vm13 = vmand %vm1659_vm9, %vm1664_vm10  ;;  %v1294_v54 = vld [vmem:[%s1786_s2 + $0x148] sm:$0xff]  ;;  %vm942_vm9 = vcmask 811008  }
 0x41a   :  { %319 = vst.msk [vmem:[#allocation3 + $0x2] sm:$0x3] %vm318_vm14, %v314_v55  ;;  %vm371_vm14 = vmand %vm1675_vm11, %vm1680_vm12 }
 0x41b   :  { %838 = vmatpush.bf16.msrb.mxu1 %v1287_v50  ;;  %935 = vmatpush.bf16.msrb.mxu3 %v1299_v16 }
 0x41c   :  { %851 = vmatpush.bf16.msrb.mxu2 %v1295_v51 }
 0x41f   :  { %839 = vmatpush.bf16.msrb.mxu1 %v1286_v53 }
 0x420   :  { %852 = vmatpush.bf16.msrb.mxu2 %v1294_v54 }
 0x427   :  { %v324_v6 = vpop.permute.xlu1 %323 }
 0x428   :  { %329 = vst.msk [vmem:[#allocation3 + $0x3] sm:$0x1] %vm328_vm3, %v324_v6  ;;  %vm392_vm3 = vcmp.ge.s32.totalorder %v227_v22, 35 }
 0x429   :  { %339 = vst.msk [vmem:[#allocation3 + $0x3] sm:$0x1] %vm338_vm4, %v334_v9  ;;  %vm393_vm4 = vcmp.lt.s32.totalorder %v227_v22, 80 }
 0x42a   :  { %vm394_vm5 = vmand %vm392_vm3, %vm393_vm4 }
 0x42f   :  { %v367_v45 = vpop.permute.xlu2 %366 }
 0x437   :  { %v344_v24 = vpop.permute.xlu0 %343 }
 0x438   :  { %v345_v26 = vrot.slane %v344_v24, 7 }
 0x43a   :  { %v347_v31 = vsel %vm346_vm7, %v345_v26, %v344_v24  ;;  %vm776_vm7 = vcmask 654336  }
 0x43b   :  { %352 = vst.msk [vmem:[#allocation3 + $0x3] sm:$0x3] %vm351_vm8, %v347_v31  ;;  %vm920_vm8 = vcmask 982016  }
 0x43f   :  { %v357_v42 = vpop.permute.xlu1 %356 }
 0x440   :  { %362 = vst.msk [vmem:[#allocation3 + $0x4] sm:$0x1] %vm361_vm13, %v357_v42 }
 0x441   :  { %372 = vst.msk [vmem:[#allocation3 + $0x4] sm:$0x1] %vm371_vm14, %v367_v45 }
 0x44f   :  { %v377_v52 = vpop.permute.xlu0 %376 }
 0x450   :  { %v378_v55 = vrot.slane %v377_v52, 7 }
 0x452   :  { %v380_v56 = vsel %vm379_vm1, %v378_v55, %v377_v52 }
 0x453   :  { %385 = vst.msk [vmem:[#allocation3 + $0x4] sm:$0x3] %vm384_vm2, %v380_v56 }
 0x457   :  { %v390_v59 = vpop.permute.xlu0 %389 }
 0x458   :  { %395 = vst.msk [vmem:[#allocation3 + $0x5] sm:$0x1] %vm394_vm5, %v390_v59 }
 0x45f   :  { %v396_v62 = vld [vmem:[#allocation3] sm:$0x3f] }
 0x460   :  { %v398_v63 = vperm.slane %v396_v62, 0  ;;  %v399_v0 = vperm.slane %v396_v62, 1  ;;  %v400_v1 = vperm.slane %v396_v62, 2  ;;  %v401_v22 = vperm.slane %v396_v62, 3 }
 0x461   :  { %v402_v6 = vperm.slane %v396_v62, 4  ;;  %v403_v7 = vperm.slane %v396_v62, 5 }
 0x462   :  { %v410_v2 = vpack.c.bf16 %v398_v63, %v398_v63  ;;  %v411_v3 = vpack.c.bf16 %v399_v0, %v399_v0  ;;  %v412_v4 = vpack.c.bf16 %v400_v1, %v400_v1  ;;  %v413_v5 = vpack.c.bf16 %v401_v22, %v401_v22  ;;  %v969_v63 = vld [vmem:[%s1787_s3] sm:$0x1] }
 0x463   :  { %v414_v8 = vpack.c.bf16 %v402_v6, %v402_v6  ;;  %v415_v9 = vpack.c.bf16 %v403_v7, %v403_v7  ;;  %v1252_v0 = vadd.f32 -1.0, %v969_v63 }
 0x464   :  { %788 = vmatmul.bf16.vlgmr.msra.gmra.mxu1 %v410_v2  ;;  %801 = vmatmul.bf16.vlgmr.msra.gmra.mxu2 %v411_v3 }
 0x465   :  { %814 = vmatmul.bf16.vlgmr.msra.gmra.mxu3 %v412_v4  ;;  %827 = vmatmul.bf16.vlgmr.msrb.gmra.mxu0 %v413_v5  ;;  %v971_v22 = vand.u32 2147483647, %v1252_v0 }
 0x474   :  { %840 = vmatmul.bf16.vlgmr.msrb.gmra.mxu1 %v414_v8  ;;  %1222 = vmatmul.msk.bf16.vlgmr.msrb.gmra.mxu2 %vm776_vm7, %v415_v9 }
 0x4e1   :  { %v789_v17 = vpop.f32.mrf.mxu1 }
 0x4e2   :  { %v828_v18 = vpop.f32.mrf.mxu0  ;;  %v790_v24 = vadd.f32 %v789_v17, %v23_v19 }
 0x4e7   :  { %v802_v20 = vpop.f32.mrf.mxu2 }
 0x4e8   :  { %v815_v21 = vpop.f32.mrf.mxu3  ;;  %v803_v26 = vadd.f32 %v802_v20, %v790_v24 }
 0x4e9   :  { %v791_v23 = vpop.f32.mrf.mxu1 }
 0x4ea   :  { %v830_v25 = vpop.f32.mrf.mxu0  ;;  %v816_v28 = vadd.f32 %v815_v21, %v803_v26 }
 0x4ec   :  { %v829_v31 = vadd.f32 %v828_v18, %v816_v28 }
 0x4ef   :  { %v804_v27 = vpop.f32.mrf.mxu2 }
 0x4f0   :  { %v817_v29 = vpop.f32.mrf.mxu3 }
 0x4f1   :  { %v841_v30 = vpop.f32.mrf.mxu1 }
 0x4f2   :  { %v842_v32 = vadd.f32 %v841_v30, %v829_v31 }
 0x4f7   :  { %v854_v33 = vpop.f32.mrf.mxu2 }
 0x4f8   :  { %v855_v34 = vadd.f32 %v854_v33, %v842_v32 }
 0x4f9   :  { %v843_v35 = vpop.f32.mrf.mxu1 }
 0x4fa   :  { %v858_v36 = vmax.f32 %v855_v34, 0.0 }
 0x4fc   :  { %v859_v37 = vpack.c.bf16 %v858_v36, %v858_v36 }
 0x4fe   :  { %1251 = vmatmul.msk.bf16.vlgmr.msrb.gmra.mxu3 %vm920_vm8, %v859_v37 }
 0x4ff   :  { %v856_v38 = vpop.f32.mrf.mxu2 }
 0x581   :  { %v937_v40 = vpop.f32.mrf.mxu3 }
 0x582   :  { %v938_v41 = vadd.f32 %v937_v40, %v24_v39 }
 0x584   :  { %v941_v42 = vmax.f32 %v938_v41, 0.0 }
 0x586   :  { %v954_v43 = vsel %vm942_vm9, %v941_v42, -inf  ;;  %v943_v44 = vsel %vm942_vm9, %v941_v42, inf }
 0x587   :  { %955 = vmax.xlane.f32.xlu2 %v954_v43  ;;  %944 = vmin.xlane.f32.xlu1 %v943_v44 }
 0x589   :  { %v939_v45 = vpop.f32.mrf.mxu3 }
 0x5fa   :  { %v956_v46 = vpop.xlane.xlu2 %955  ;;  %v945_v47 = vpop.xlane.xlu1 %944 }
 0x5fb   :  { %v957_v48 = vrot.slane %v956_v46, 4  ;;  %v946_v49 = vrot.slane %v945_v47, 4 }
 0x5fd   :  { %v958_v50 = vmax.f32 %v956_v46, %v957_v48  ;;  %v947_v51 = vmin.f32 %v945_v47, %v946_v49 }
 0x5ff   :  { %v959_v52 = vrot.slane %v958_v50, 2  ;;  %v948_v53 = vrot.slane %v947_v51, 2 }
 0x601   :  { %v949_v54 = vmin.f32 %v947_v51, %v948_v53  ;;  %v960_v55 = vmax.f32 %v958_v50, %v959_v52 }
 0x603   :  { %v950_v56 = vrot.slane %v949_v54, 1  ;;  %v961_v57 = vrot.slane %v960_v55, 1 }
 0x605   :  { %v951_v58 = vmin.f32 %v949_v54, %v950_v56  ;;  %v962_v59 = vmax.f32 %v960_v55, %v961_v57 }
 0x607   :  { %1306 = vpush %v951_v58 }
 0x608   :  { %1308 = vpush %v962_v59 }
 0x638   :  { %s1307_s1 = spop %1306 }
 0x639   :  { %v953_v60 = vstv %s1307_s1  ;;  %s1309_s0 = spop %1308 }
 0x63a   :  { %v964_v61 = vstv %s1309_s0  ;;  %v965_v1 = vsub.f32 %v941_v42, %v953_v60 }
 0x63b   :  { %v966_v62 = vsub.f32 %v964_v61, %v953_v60 }
 0x63d   :  { %1360 = vrcp.f32 %v966_v62 }
 0x63e   :  { %1362 = vrcp.f32 %v1424_v13 }
 0x643   :  { %v1361_v2 = vpop.eup %1360 }
 0x644   :  { %v968_v3 = vmul.f32 %v1361_v2, %v965_v1  ;;  %v1363_v14 = vpop.eup %1362 }
 0x645   :  { %v985_v15 = vmul.f32 100.0, %v1363_v14  ;;  %vm989_vm10 = vweird.f32 %v1363_v14 }
 0x646   :  { %v972_v4 = vmul.f32 %v971_v22, %v968_v3 }
 0x647   :  { %v986_v16 = vsub.f32 1.0, %v985_v15 }
 0x648   :  { %v973_v5 = vsel %vm942_vm9, %v972_v4, 0.0 }
 0x649   :  { %974 = vadd.xlane.f32.xlu0 %v973_v5  ;;  %v987_v17 = vmul.f32 %v1363_v14, %v986_v16 }
 0x64b   :  { %v988_v18 = vadd.f32 %v1363_v14, %v987_v17 }
 0x64d   :  { %v990_v19 = vsel %vm989_vm10, %v1363_v14, %v988_v18 }
 0x6bc   :  { %v975_v6 = vpop.xlane.xlu0 %974 }
 0x6bd   :  { %v976_v7 = vrot.slane %v975_v6, 4 }
 0x6bf   :  { %v977_v8 = vadd.f32 %v976_v7, %v975_v6 }
 0x6c1   :  { %v978_v9 = vrot.slane %v977_v8, 2 }
 0x6c3   :  { %v979_v10 = vadd.f32 %v978_v9, %v977_v8 }
 0x6c5   :  { %v980_v11 = vrot.slane %v979_v10, 1 }
 0x6c7   :  { %v981_v12 = vadd.f32 %v980_v11, %v979_v10 }
 0x6c9   :  { %1310 = vpush %v981_v12 }
 0x6fa   :  { %s1311_s3 = spop %1310 }
 0x6fb   :  { %v983_v20 = vstv %s1311_s3 }
 0x6fc   :  { %v991_v21 = vmul.f32 %v990_v19, %v983_v20 }
 0x6fe   :  { %v992_v23 = vadd.f32 %v991_v21, %v968_v3 }
 0x700   :  { %v993_v24 = vmul.f32 %v992_v23, %v969_v63 }
 0x702   :  { %v994_v25 = vsel %vm942_vm9, %v993_v24, 0.0 }
 0x703   :  { %995 = vadd.xlane.f32.xlu2 %v994_v25 }
 0x776   :  { %v996_v26 = vpop.xlane.xlu2 %995 }
 0x777   :  { %v997_v27 = vrot.slane %v996_v26, 4 }
 0x779   :  { %v998_v28 = vadd.f32 %v997_v27, %v996_v26 }
 0x77b   :  { %v999_v29 = vrot.slane %v998_v28, 2 }
 0x77d   :  { %v1000_v30 = vadd.f32 %v999_v29, %v998_v28 }
 0x77f   :  { %v1001_v31 = vrot.slane %v1000_v30, 1 }
 0x781   :  { %v1002_v32 = vadd.f32 %v1001_v31, %v1000_v30 }
 0x783   :  { %1312 = vpush %v1002_v32 }
 0x7b4   :  { %s1313_s23 = spop %1312 }
 0x7b5   :  { %v1004_v33 = vstv %s1313_s23 }
 0x7b6   :  { %1364 = vrcp.f32 %v1004_v33  ;;  %v1016_v37 = vand.u32 2147483648, %v1004_v33  ;;  %v1014_v39 = vand.u32 2147483647, %v1004_v33  ;;  %vm1010_vm12 = vweird.f32 %v1004_v33 }
 0x7b8   :  { %v1017_v41 = vor.u32 1.1754944e-38, %v1016_v37  ;;  %vm1015_vm14 = vcmp.eq.f32.partialorder %v1014_v39, 8.507059e+37 }
 0x7bc   :  { %v1365_v34 = vpop.eup %1364 }
 0x7bd   :  { %v1006_v35 = vmul.f32 %v1365_v34, %v1004_v33  ;;  %vm1011_vm11 = vweird.f32 %v1365_v34 }
 0x7be   :  { %vm1012_vm13 = vmor %vm1010_vm12, %vm1011_vm11 }
 0x7bf   :  { %v1007_v36 = vsub.f32 1.0, %v1006_v35 }
 0x7c1   :  { %v1008_v38 = vmul.f32 %v1365_v34, %v1007_v36 }
 0x7c3   :  { %v1009_v40 = vadd.f32 %v1365_v34, %v1008_v38 }
 0x7c5   :  { %v1013_v42 = vsel %vm1012_vm13, %v1365_v34, %v1009_v40 }
 0x7c6   :  { %v1018_v43 = vsel %vm1015_vm14, %v1017_v41, %v1013_v42 }
 0x7c7   :  { %v1019_v44 = vmul.f32 %v1018_v43, %v993_v24 }
 0x7c9   :  { %1020 = vst.msk [vmem:[#allocation4] sm:$0x1] %vm942_vm9, %v1019_v44 }
 0x7ca   :  { %1031 = dma.vmem_to_hbm [thread:$0]  %s1027_s25, 16, %s1029_s28, [#allocation5]  }
 0x7cb   :  { %1390 = dma.done.wait [#allocation5], 16  }
 0x7cc   :  { %1391 = vsyncadd [#allocation5], 4294967280 }
 0x7cd   :  { %1036 = vsyncpa [#allocation5], 1 }

</bundles_post_ra>
